<compile_context>
chip_gen: v5e
topology: v5e:2x2
jax: 0.10.0
libtpu: 0.0.40
codegen_flags: <defaults>
</compile_context>

<pallas_src>
import math

import jax
import jax.numpy as jnp
from jax.experimental import pallas as pl
from jax.experimental.pallas import tpu as pltpu


# ----------------------------- kernel body ---------------------------------

def _gwl_kernel(x_ref, w_ref, b_ref, o_ref):
    # x_ref: (TB, TC, D), w_ref: (1, TC, D), b_ref: (1, TC), o_ref: (TB, TC)
    prod = x_ref[...] * w_ref[...]                     # VPU, native dtype, bcast over TB
    s = jnp.sum(prod, axis=-1, dtype=jnp.float32)      # XLU lane-reduce, f32 accumulation
    s = s + b_ref[...].astype(jnp.float32)             # (1, TC) broadcasts over TB
    o_ref[...] = s.astype(o_ref.dtype)


# --------------------------- tile / VMEM planning ---------------------------

def _vmem_capacity_bytes():
    try:
        return int(pltpu.get_tpu_info().vmem_capacity_bytes)
    except Exception:
        return 64 * 1024 * 1024      # v7x floor; conservative on v5e/v6e


def _plan_bytes(tb, tc, D, itemsize):
    x_slab = 2 * tb * tc * D * itemsize     # double-buffered streamed input
    w_slab = 2 * tc * D * itemsize          # conservative: assume 2 W buffers
    b_slab = 2 * tc * 4
    o_slab = 2 * tb * tc * itemsize         # double-buffered output
    return x_slab + w_slab + b_slab + o_slab


def _plan_tiles(B, C, D, itemsize, plan_budget_bytes):
    """Pick (TB, TC) for a (class-outer, batch-inner) grid.

    Layout legality:
      x block (TB, TC, D): D is full-extent; TC must be a multiple of 8 or == C.
      out block (TB, TC):  TC multiple of 128 or == C; TB multiple of 8 or == B.
    => TC in {C} U {multiples of 128 <= C}; TB in {B} U {multiples of 8 <= B}.
    """
    tc_cands = sorted({C} | set(range(128, C + 1, 128)))
    tb_cands = sorted({B} | set(range(8, B + 1, 8)))

    tb_min = tb_cands[0]
    fitting_tc = [tc for tc in tc_cands
                  if _plan_bytes(tb_min, tc, D, itemsize) <= plan_budget_bytes]
    TC = max(fitting_tc) if fitting_tc else tc_cands[0]

    fitting_tb = [tb for tb in tb_cands
                  if _plan_bytes(tb, TC, D, itemsize) <= plan_budget_bytes]
    TB = max(fitting_tb) if fitting_tb else tb_cands[0]

    # Prefer >=4 grid steps (pipeline depth + v7x megacore sharding), but never
    # shrink the per-step x slab below ~4 MiB just to add steps.
    def steps(tb, tc):
        return pl.cdiv(B, tb) * pl.cdiv(C, tc)

    while steps(TB, TC) < 4:
        smaller = [t for t in tb_cands if t < TB]
        if not smaller:
            break
        cand = max(smaller)
        if cand * TC * D * itemsize < (4 << 20):
            break
        TB = cand

    return TB, TC


def _maybe_single_buffered(block_shape, index_map):
    """BlockSpec with buffer_count=1 when supported (constant-index operands)."""
    try:
        return pl.BlockSpec(block_shape, index_map, pipeline_mode=pl.Buffered(1))
    except (AttributeError, TypeError):
        return pl.BlockSpec(block_shape, index_map)


# ------------------------------- wrapper ------------------------------------

def group_wise_linear(x, W, b):
    """x: (B, C, D); W: (1, C, D); b: (1, C)  ->  (B, C)."""
    B, C, D = x.shape
    itemsize = jnp.dtype(x.dtype).itemsize

    vmem_cap = _vmem_capacity_bytes()
    # ~2/3 of physical VMEM for the block plan: ~42 MiB on v7x (64 MiB/TC),
    # ~85 MiB on v5e/v6e (128 MiB).
    plan_budget = (2 * vmem_cap) // 3
    TB, TC = _plan_tiles(B, C, D, itemsize, plan_budget)

    nc = pl.cdiv(C, TC)
    nb = pl.cdiv(B, TB)
    grid = (nc, nb)          # class-outer, batch-inner: W/b block index changes only nc times

    # index maps receive grid indices in grid order: (class_tile j, batch_tile i)
    x_spec = pl.BlockSpec((TB, TC, D), lambda j, i: (i, j, 0))
    if nc == 1:
        # Constant index map across the whole grid -> fetch once, keep one copy.
        w_spec = _maybe_single_buffered((1, TC, D), lambda j, i: (0, j, 0))
        b_spec = _maybe_single_buffered((1, TC), lambda j, i: (0, j))
    else:
        w_spec = pl.BlockSpec((1, TC, D), lambda j, i: (0, j, 0))
        b_spec = pl.BlockSpec((1, TC), lambda j, i: (0, j))
    out_spec = pl.BlockSpec((TB, TC), lambda j, i: (i, j))

    # VMEM limit derived from the actual plan (+ internal-scratch headroom),
    # capped below physical capacity (v7x has only 64 MiB per TensorCore).
    vmem_limit = max(32 << 20, _plan_bytes(TB, TC, D, itemsize) + (8 << 20))
    vmem_limit = min(vmem_limit, vmem_cap - (4 << 20))

    # Advisory cost hint so XLA can overlap surrounding HLO with this mem-bound call.
    bytes_accessed = (B * C * D * itemsize
                      + C * D * jnp.dtype(W.dtype).itemsize
                      + C * jnp.dtype(b.dtype).itemsize
                      + B * C * itemsize)
    cost = pl.CostEstimate(flops=2 * B * C * D, transcendentals=0,
                           bytes_accessed=bytes_accessed)

    return pl.pallas_call(
        _gwl_kernel,
        out_shape=jax.ShapeDtypeStruct((B, C), x.dtype),
        grid=grid,
        in_specs=[x_spec, w_spec, b_spec],
        out_specs=out_spec,
        compiler_params=pltpu.CompilerParams(
            dimension_semantics=("parallel", "parallel"),   # no reduction axis in the grid
            vmem_limit_bytes=int(vmem_limit),
        ),
        cost_estimate=cost,
    )(x, W, b)


# --------------------------- parameter init ---------------------------------

def init_params(key, num_class, hidden_dim, dtype=jnp.float32):
    # Matches PyTorch reset_parameters: uniform(-stdv, stdv), stdv = 1/sqrt(hidden_dim)
    stdv = 1.0 / math.sqrt(hidden_dim)
    kw, kb = jax.random.split(key)
    W = jax.random.uniform(kw, (1, num_class, hidden_dim), dtype,
                           minval=-stdv, maxval=stdv)
    b = jax.random.uniform(kb, (1, num_class), dtype,
                           minval=-stdv, maxval=stdv)
    return W, b


if __name__ == "__main__":
    key = jax.random.PRNGKey(0)
    k_param, k_x = jax.random.split(key)

    batch = 2
    num_class = 8
    hidden_dim = 32

    W, b = init_params(k_param, num_class, hidden_dim)
    x = jax.random.normal(k_x, (batch, num_class, hidden_dim), jnp.float32)

    out = jax.block_until_ready(group_wise_linear(x, W, b))

    # Plain-JAX reference (same semantics as the PyTorch forward).
    ref = jnp.sum(W * x, axis=-1) + b
    assert out.shape == (batch, num_class)
    assert jnp.allclose(out, ref, atol=1e-5, rtol=1e-5)

    print("KERNEL_OK")
</pallas_src>

<mosaic_0001>
module attributes {stable_mosaic.version = 11 : i64} {
  func.func @_gwl_kernel(%arg0: i32, %arg1: i32, %arg2: memref<2x8x32xf32, #tpu.memory_space<vmem>>, %arg3: memref<1x8x32xf32, #tpu.memory_space<vmem>>, %arg4: memref<1x8xf32, #tpu.memory_space<vmem>>, %arg5: memref<2x8xf32, #tpu.memory_space<vmem>>) attributes {dimension_semantics = [#tpu.dimension_semantics<parallel>, #tpu.dimension_semantics<parallel>], iteration_bounds = array<i64: 1, 1>, scalar_prefetch = 0 : i64, scratch_operands = 0 : i64, tpu.core_type = #tpu.core_type<tc>, window_params = [{transform_indices = @transform_0, window_bounds = array<i64: 2, 8, 32>}, {pipeline_mode = #tpu.pipeline_mode<synchronous>, transform_indices = @transform_1, window_bounds = array<i64: 1, 8, 32>}, {pipeline_mode = #tpu.pipeline_mode<synchronous>, transform_indices = @transform_2, window_bounds = array<i64: 1, 8>}, {transform_indices = @transform_3, window_bounds = array<i64: 2, 8>}]} {
    %c0 = arith.constant 0 : index
    %c0_0 = arith.constant 0 : index
    %c0_1 = arith.constant 0 : index
    %0 = vector.load %arg2[%c0, %c0_0, %c0_1] : memref<2x8x32xf32, #tpu.memory_space<vmem>>, vector<2x8x32xf32>
    %c0_2 = arith.constant 0 : index
    %c0_3 = arith.constant 0 : index
    %c0_4 = arith.constant 0 : index
    %1 = vector.load %arg3[%c0_2, %c0_3, %c0_4] : memref<1x8x32xf32, #tpu.memory_space<vmem>>, vector<1x8x32xf32>
    %2 = vector.broadcast %1 : vector<1x8x32xf32> to vector<2x8x32xf32>
    %3 = arith.mulf %0, %2 : vector<2x8x32xf32>
    %cst = arith.constant dense<0.000000e+00> : vector<2x8xf32>
    %4 = vector.multi_reduction <add>, %3, %cst [2] : vector<2x8x32xf32> to vector<2x8xf32>
    %c0_5 = arith.constant 0 : index
    %c0_6 = arith.constant 0 : index
    %5 = vector.load %arg4[%c0_5, %c0_6] : memref<1x8xf32, #tpu.memory_space<vmem>>, vector<1x8xf32>
    %6 = vector.broadcast %5 : vector<1x8xf32> to vector<2x8xf32>
    %7 = arith.addf %4, %6 : vector<2x8xf32>
    %c0_7 = arith.constant 0 : index
    %c0_8 = arith.constant 0 : index
    %8 = vector.load %arg5[%c0_7, %c0_8] : memref<2x8xf32, #tpu.memory_space<vmem>>, vector<2x8xf32>
    tpu.vector_store %arg5[%c0_7, %c0_8], %7 {strides = array<i32>} : memref<2x8xf32, #tpu.memory_space<vmem>>, vector<2x8xf32>,
    return
  }
  func.func @transform_0(%arg0: i32, %arg1: i32) -> (i32, i32, i32) {
    %c0_i32 = arith.constant 0 : i32
    %c0_i32_0 = arith.constant 0 : i32
    return %arg1, %arg0, %c0_i32 : i32, i32, i32
  }
  func.func @transform_1(%arg0: i32, %arg1: i32) -> (i32, i32, i32) {
    %c0_i32 = arith.constant 0 : i32
    %c0_i32_0 = arith.constant 0 : i32
    %c0_i32_1 = arith.constant 0 : i32
    return %c0_i32, %arg0, %c0_i32_0 : i32, i32, i32
  }
  func.func @transform_2(%arg0: i32, %arg1: i32) -> (i32, i32) {
    %c0_i32 = arith.constant 0 : i32
    %c0_i32_0 = arith.constant 0 : i32
    return %c0_i32, %arg0 : i32, i32
  }
  func.func @transform_3(%arg0: i32, %arg1: i32) -> (i32, i32) {
    %c0_i32 = arith.constant 0 : i32
    return %arg1, %arg0 : i32, i32
  }
}

</mosaic_0001>

<bundles_post_ra>
// kernel: tpu_custom_call.1
= control target key start
LH: loop header
LB: loop body
LE: loop exit
PB: predicated region body
PF: predicated region fallthrough
CT: control target
= control target key end

     0   :  { %8 = vsyncpa [#allocation3], 0  ;;  %s231_s0 = inlined_call_operand.hbm [shape: f32[2,8,32], index: 0, kind: input, shape index: {}]   ;;  %s232_s1 = inlined_call_operand.hbm [shape: f32[1,8,32], index: 1, kind: input, shape index: {}]   ;;  %s233_s2 = inlined_call_operand.vmem [shape: f32[1,8], index: 2, kind: input, shape index: {}]   ;;  %s234_s3 = inlined_call_operand.hbm [shape: f32[2,8], index: 3, kind: output, shape index: {}]  }
   0x1   :  { %9 = vsyncpa [#allocation6], 0 }
   0x2   :  { %10 = vsyncpa [#allocation4], 0  ;;  %s15_s14 = sshll.u32 %s231_s0, 4  ;;  %s193_s15 = smov [#allocation2]   ;;  %s16_s14 = int_to_ptr.hbm [resolvable:$true] %s15_s14 }
   0x3   :  { %s17_s16 = sshll.u32 %s193_s15, 4  ;;  %s29_s19 = sshll.u32 %s232_s1, 4  ;;  %s18_s16 = int_to_ptr.vmem [resolvable:$true] %s17_s16  ;;  %s30_s19 = int_to_ptr.hbm [resolvable:$true] %s29_s19 }
   0x4   :  { %s194_s20 = smov 128   ;;  %s195_s21 = smov 8  }
   0x5   :  { %23 = dma.hbm_to_vmem [thread:$0]  %s16_s14, 256, %s18_s16, [#allocation3], %s194_s20, %s194_s20, %s195_s21  }
   0x6   :  { %s196_s22 = smov [#allocation5]  }
   0x7   :  { %s31_s23 = sshll.u32 %s196_s22, 4  ;;  %s32_s23 = int_to_ptr.vmem [resolvable:$true] %s31_s23 }
   0x8   :  { %34 = dma.hbm_to_vmem [thread:$0]  %s30_s19, 128, %s32_s23, [#allocation6]  }
   0x9   :  { %187 = dma.done.wait [#allocation3], 256  }
   0xa   :  { %188 = vsyncadd [#allocation3], 4294967040 }
   0xb   :  { %189 = dma.done.wait [#allocation6], 128  }
   0xc   :  { %190 = vsyncadd [#allocation6], 4294967168  ;;  %v60_v0 = vlaneseq  ;;  %v45_v2 = vld [vmem:[#allocation2] sm:$0xff]  ;;  %v47_v3 = vld [vmem:[#allocation5] sm:$0xff]  ;;  %vm50_vm0 = vcmask 261120   ;;  %v197_v10 = vmov 0  }
   0xd   :  { %v48_v4 = vmul.f32 %v47_v3, %v45_v2  ;;  %v114_v5 = vld [vmem:[%s233_s2] ss:$0 sm:$0xff]  ;;  %v46_v6 = vld [vmem:[#allocation2 + $0x8] sm:$0xff]  ;;  %112 = vset.pattern.permute.xlu2 %v197_v10  ;;  %113 = vset.pattern.permute.xlu0 %v197_v10  ;;  %s198_s2 = smov [#allocation7]   ;;  %s93_s27 = sshll.u32 %s234_s3, 4  ;;  %vm81_vm1 = vcmask 1041409   ;;  %s94_s27 = int_to_ptr.hbm [resolvable:$true] %s93_s27 }
   0xe   :  { %v61_v1 = vshrl.u32 %v60_v0, 7  ;;  %v49_v8 = vmul.f32 %v47_v3, %v46_v6  ;;  %v78_v16 = vand.u32 127, %v60_v0  ;;  %s91_s24 = sshll.u32 %s198_s2, 4  ;;  %vm84_vm2 = vcmask 58368   ;;  %s92_s24 = int_to_ptr.vmem [resolvable:$true] %s91_s24 }
   0xf   :  { %v51_v7 = vsel %vm50_vm0, %v48_v4, 0.0 }
  0x10   :  { %110 = vset.pattern.permute.xlu1 %v61_v1  ;;  %52 = vadd.xlane.f32.xlu0 %v51_v7  ;;  %v54_v9 = vsel %vm50_vm0, %v49_v8, 0.0 }
  0x18   :  { %64 = vperm.xlu1 %110, %v114_v5   ;;  %55 = vadd.xlane.f32.xlu0 %v54_v9 }
  0x20   :  { %111 = vset.pattern.permute.xlu1 %v197_v10 }
  0x83   :  { %v53_v12 = vpop.xlane.xlu0 %52 }
  0x8a   :  { %v65_v11 = vpop.permute.xlu1 %64 }
  0x8b   :  { %v67_v13 = vadd.f32 %v65_v11, %v53_v12  ;;  %v56_v14 = vpop.xlane.xlu0 %55 }
  0x8c   :  { %v68_v15 = vadd.f32 %v65_v11, %v56_v14 }
  0x8d   :  { %72 = vperm.xlu1 %111, %v67_v13  }
  0x8e   :  { %75 = vperm.xlu2 %112, %v68_v15  }
  0xe8   :  { %v76_v17 = vpop.permute.xlu2 %75 }
  0xe9   :  { %v80_v19 = vperm.slane %v76_v17, %v78_v16 }
  0xff   :  { %v73_v18 = vpop.permute.xlu1 %72 }
 0x100   :  { %v79_v20 = vperm.slane %v73_v18, %v78_v16 }
 0x102   :  { %v82_v21 = vsel %vm81_vm1, %v80_v19, %v79_v20 }
 0x103   :  { %85 = vst.msk [vmem:[#allocation7] sm:$0x3] %vm84_vm2, %v82_v21 }
 0x104   :  { %96 = dma.vmem_to_hbm [thread:$0]  %s92_s24, 32, %s94_s27, [#allocation4]  }
 0x105   :  { %191 = dma.done.wait [#allocation4], 32  }
 0x106   :  { %192 = vsyncadd [#allocation4], 4294967264 }
 0x107   :  { %101 = vsyncpa [#allocation3], 1 }
 0x108   :  { %102 = vsyncpa [#allocation6], 1 }
 0x109   :  { %103 = vsyncpa [#allocation4], 1 }

</bundles_post_ra>
